<compile_context>
chip_gen: v7x
topology: tpu7x:2x2x1
jax: 0.10.0
libtpu: 0.0.40
codegen_flags: <defaults>
</compile_context>

<pallas_src>
import functools
import math

import jax
import jax.numpy as jnp
from jax.experimental import pallas as pl
from jax.experimental.pallas import tpu as pltpu


_EPS = 1e-7
_LOG_EPS = math.log(_EPS)            # log(eps)
_LOG_1M_EPS = math.log(1.0 - _EPS)   # log(1 - eps)

_BLOCK_BYTES = 2 * 1024 * 1024       # target bytes per input block (per review)

_COMPILER_PARAMS = pltpu.CompilerParams(
    dimension_semantics=("parallel", "arbitrary"),   # (core split, reduction)
    vmem_limit_bytes=32 * 1024 * 1024,               # safe on v5e/v6e/v7x
)


# ----------------------------- math helpers --------------------------------


def _softplus(x):
    # Stable softplus: max(x, 0) + log(1 + exp(-|x|)); exp(-|x|) <= 1.
    return jnp.maximum(x, 0.0) + jnp.log(1.0 + jnp.exp(-jnp.abs(x)))


def _log_sigmoid_clipped(x):
    # log(clamp(sigmoid(x), eps, 1-eps)) == clamp(-softplus(-x), log eps, log(1-eps))
    return jnp.clip(-_softplus(-x), _LOG_EPS, _LOG_1M_EPS)


def _log_one_minus_sigmoid_clipped(x):
    # log(1 - clamp(sigmoid(x), eps, 1-eps)) == clamp(-softplus(x), log eps, log(1-eps))
    return jnp.clip(-_softplus(x), _LOG_EPS, _LOG_1M_EPS)


def _cdiv(a, b):
    return -(-a // b)


# ----------------------------- layout helpers -------------------------------


def _as_2d(x):
    """Lane-dense 2-D view: (-1, 128) when possible, else (-1, last_dim)."""
    total = x.size
    if total % 128 == 0:
        return x.reshape(total // 128, 128)
    if x.ndim >= 2:
        return x.reshape(-1, x.shape[-1])
    return x.reshape(1, total)


def _choose_tile(rows, d, itemsize, max_tile_rows):
    """Row-tile size: ~2 MiB per block (from actual itemsize), multiple of 16."""
    t = (_BLOCK_BYTES // (max(d, 1) * itemsize)) // 16 * 16
    t = max(16, t)
    if max_tile_rows is not None:
        t = min(t, max(16, (max_tile_rows // 16) * 16))
    return rows if rows <= t else t


# ------------------------- generic reduction kernel -------------------------


def _reduce_kernel(*refs, contrib_fn, n_sums, tile, acc_rows, n_rows, n_tiles,
                   tiles_per_core, needs_mask):
    in_refs = refs[:-2]
    out_ref = refs[-2]
    acc_ref = refs[-1]

    c = pl.program_id(0)
    i = pl.program_id(1)
    t = c * tiles_per_core + i                # global row-tile index (may exceed n_tiles-1)
    d = acc_ref.shape[-1]

    @pl.when(i == 0)
    def _():
        acc_ref[...] = jnp.zeros_like(acc_ref)

    def accumulate(mask):
        contribs = contrib_fn(*in_refs)       # tuple of (tile, d) f32 arrays
        for k in range(n_sums):
            v = contribs[k]
            if mask is not None:
                v = jnp.where(mask, v, 0.0)   # select (not multiply): safe over OOB garbage
            # Fold rows into the (acc_rows, d) vector accumulator with pure VPU adds.
            acc_ref[k] += v.reshape(-1, acc_rows, d).sum(axis=0)

    if needs_mask:
        @pl.when(t < n_tiles - 1)
        def _():
            accumulate(None)                  # interior tiles: unmasked

        @pl.when(t >= n_tiles - 1)
        def _():                              # last real tile + any duplicate tiles
            row = jax.lax.broadcasted_iota(jnp.int32, (tile, d), 0)
            accumulate((row + t * tile) < n_rows)
    else:
        accumulate(None)

    @pl.when(i == pl.num_programs(1) - 1)
    def _():
        out_ref[0] = acc_ref[...]             # per-core partial-sum block


def _tiled_reduce(contrib_fn, n_sums, tensors, smem_inputs=(), max_tile_rows=None):
    """Run one tiled/pipelined pass over `tensors` (same 2-D shape); returns (n_sums,) sums."""
    rows, d = tensors[0].shape
    for x in tensors[1:]:
        assert x.shape == (rows, d)
    itemsize = max(int(x.dtype.itemsize) for x in tensors)

    tile = _choose_tile(rows, d, itemsize, max_tile_rows)
    n_tiles = _cdiv(rows, tile)
    n_cores = 2 if n_tiles >= 2 else 1        # v7x megacore split; cheap no-op on 1-TC chips
    tpc = _cdiv(n_tiles, n_cores)
    needs_mask = (rows != n_tiles * tile) or (n_cores * tpc != n_tiles)
    acc_rows = 8 if tile % 8 == 0 else tile

    if n_cores * tpc == n_tiles:
        def in_map(c, i):
            return (c * tpc + i, 0)
    else:
        last = n_tiles - 1

        def in_map(c, i):
            # Clamp duplicate tiles of the odd core onto the last real block
            # (fully masked out in-kernel), so no fully-OOB DMA is issued.
            return (jnp.minimum(c * tpc + i, last), 0)

    in_specs = ([pl.BlockSpec(memory_space=pltpu.MemorySpace.SMEM)] * len(smem_inputs)
                + [pl.BlockSpec((tile, d), in_map)] * len(tensors))

    kernel = functools.partial(
        _reduce_kernel, contrib_fn=contrib_fn, n_sums=n_sums, tile=tile,
        acc_rows=acc_rows, n_rows=rows, n_tiles=n_tiles, tiles_per_core=tpc,
        needs_mask=needs_mask)

    out = pl.pallas_call(
        kernel,
        out_shape=jax.ShapeDtypeStruct((n_cores, n_sums, acc_rows, d), jnp.float32),
        grid=(n_cores, tpc),
        in_specs=in_specs,
        out_specs=pl.BlockSpec((1, n_sums, acc_rows, d), lambda c, i: (c, 0, 0, 0)),
        scratch_shapes=[pltpu.VMEM((n_sums, acc_rows, d), jnp.float32)],
        compiler_params=_COMPILER_PARAMS,
    )(*smem_inputs, *tensors)

    return jnp.sum(out, axis=(0, 2, 3))       # tiny combine in the wrapper


# ------------------------- per-loss contribution fns ------------------------


def _bce_fused_contrib(pos_ref, neg_ref):
    pos = pos_ref[...].astype(jnp.float32)
    neg = neg_ref[...].astype(jnp.float32)
    return (_log_sigmoid_clipped(pos), _log_one_minus_sigmoid_clipped(neg))


def _bce_pos_contrib(x_ref):
    return (_log_sigmoid_clipped(x_ref[...].astype(jnp.float32)),)


def _bce_neg_contrib(x_ref):
    return (_log_one_minus_sigmoid_clipped(x_ref[...].astype(jnp.float32)),)


def _mine_fused_contrib(pos_ref, neg_ref):
    pos = pos_ref[...].astype(jnp.float32)
    neg = neg_ref[...].astype(jnp.float32)
    return (pos, jnp.exp(neg))


def _sum_contrib(x_ref):
    return (x_ref[...].astype(jnp.float32),)


def _sum_exp_contrib(x_ref):
    return (jnp.exp(x_ref[...].astype(jnp.float32)),)


def _nce_term_contrib(log_s_ref, pos_ref):
    pos = pos_ref[...].astype(jnp.float32)
    log_s = log_s_ref[0, 0]
    # pos - log(exp(pos) + S) == -softplus(log(S) - pos); stable, no exp(pos) overflow.
    return (-_softplus(log_s - pos),)


# --------------------------------- wrapper -----------------------------------


@functools.partial(jax.jit, static_argnames=("loss", "max_tile_rows"))
def lim_loss(pos: jax.Array, neg: jax.Array, loss: str = "bce",
             max_tile_rows: int | None = None) -> jax.Array:
    """Pallas implementation of LIMLoss.forward (returns a scalar)."""
    pos2 = _as_2d(pos)
    neg2 = _as_2d(neg)
    n_pos = float(pos2.size)
    n_neg = float(neg2.size)
    fused = pos2.shape == neg2.shape

    if loss == "bce":
        if fused:
            s = _tiled_reduce(_bce_fused_contrib, 2, [pos2, neg2],
                              max_tile_rows=max_tile_rows)
            s_pos, s_neg = s[0], s[1]
        else:
            s_pos = _tiled_reduce(_bce_pos_contrib, 1, [pos2],
                                  max_tile_rows=max_tile_rows)[0]
            s_neg = _tiled_reduce(_bce_neg_contrib, 1, [neg2],
                                  max_tile_rows=max_tile_rows)[0]
        return -(s_pos / n_pos + s_neg / n_neg)

    if loss == "mine":
        if fused:
            s = _tiled_reduce(_mine_fused_contrib, 2, [pos2, neg2],
                              max_tile_rows=max_tile_rows)
            s_pos, s_exp_neg = s[0], s[1]
        else:
            s_pos = _tiled_reduce(_sum_contrib, 1, [pos2],
                                  max_tile_rows=max_tile_rows)[0]
            s_exp_neg = _tiled_reduce(_sum_exp_contrib, 1, [neg2],
                                      max_tile_rows=max_tile_rows)[0]
        return -(s_pos / n_pos - jnp.log(s_exp_neg / n_neg))

    if loss == "nce":
        # Pass 1: S = sum(exp(neg)); pass 2 consumes log(S) from SMEM.
        s_exp_neg = _tiled_reduce(_sum_exp_contrib, 1, [neg2],
                                  max_tile_rows=max_tile_rows)[0]
        log_s = jnp.log(s_exp_neg).reshape(1, 1).astype(jnp.float32)
        s_term = _tiled_reduce(_nce_term_contrib, 1, [pos2],
                               smem_inputs=[log_s],
                               max_tile_rows=max_tile_rows)[0]
        return -(s_term / n_pos)

    raise ValueError(loss)


# --------------------------- pure-JAX reference -----------------------------


def _ref_lim_loss(pos, neg, loss):
    pos = pos.astype(jnp.float32)
    neg = neg.astype(jnp.float32)
    if loss == "bce":
        p = jnp.clip(jax.nn.sigmoid(pos), _EPS, 1.0 - _EPS)
        n = jnp.clip(jax.nn.sigmoid(neg), _EPS, 1.0 - _EPS)
        return -(jnp.mean(jnp.log(p)) + jnp.mean(jnp.log(1.0 - n)))
    if loss == "mine":
        return -(jnp.mean(pos) - jnp.log(jnp.mean(jnp.exp(neg))))
    if loss == "nce":
        s = jnp.sum(jnp.exp(neg))
        return -jnp.mean(pos - jnp.log(jnp.exp(pos) + s))
    raise ValueError(loss)


# --------------------------------- main -------------------------------------

if __name__ == "__main__":
    key = jax.random.PRNGKey(0)
    k1, k2, k3, k4 = jax.random.split(key, 4)

    cases = [
        # (name, pos, neg, max_tile_rows override)
        ("f32_8x128",
         jax.random.normal(k1, (8, 128), jnp.float32),
         jax.random.normal(k2, (8, 128), jnp.float32), None),
        # Repacked to (30,128); tile=16 forces 2-core grid + masked partial last tile.
        ("f32_40x96_tiled",
         jax.random.normal(k1, (40, 96), jnp.float32),
         jax.random.normal(k2, (40, 96), jnp.float32), 16),
        # bf16 inputs; 5 tiles -> clamped duplicate tile on the 2nd core + masked tail.
        ("bf16_65x128_tiled",
         jax.random.normal(k3, (65, 128), jnp.float32).astype(jnp.bfloat16),
         jax.random.normal(k4, (65, 128), jnp.float32).astype(jnp.bfloat16), 16),
        # Different pos/neg shapes -> non-fused (separate-pass) path.
        ("f32_mixed_shapes",
         jax.random.normal(k3, (8, 128), jnp.float32),
         jax.random.normal(k4, (12, 64), jnp.float32), None),
    ]

    ok = True
    for name, pos, neg, max_tile in cases:
        for loss_name in ("bce", "mine", "nce"):
            out = lim_loss(pos, neg, loss=loss_name, max_tile_rows=max_tile)
            out = jax.block_until_ready(out)
            ref = _ref_lim_loss(pos, neg, loss_name)
            if not jnp.allclose(out, ref, rtol=1e-5, atol=1e-5):
                ok = False
                print(f"MISMATCH {name} {loss_name}: kernel={out} ref={ref}")

    if ok:
        print("KERNEL_OK")
</pallas_src>

<mosaic_0001>
module attributes {stable_mosaic.version = 11 : i64} {
  func.func @_reduce_kernel(%arg0: i32, %arg1: i32, %arg2: memref<8x128xf32, #tpu.memory_space<vmem>>, %arg3: memref<8x128xf32, #tpu.memory_space<vmem>>, %arg4: memref<1x2x8x128xf32, #tpu.memory_space<vmem>>, %arg5: memref<2x8x128xf32, #tpu.memory_space<vmem>>) attributes {dimension_semantics = [#tpu.dimension_semantics<parallel>, #tpu.dimension_semantics<arbitrary>], iteration_bounds = array<i64: 1, 1>, scalar_prefetch = 0 : i64, scratch_operands = 1 : i64, tpu.core_type = #tpu.core_type<tc>, window_params = [{transform_indices = @transform_0, window_bounds = array<i64: 8, 128>}, {transform_indices = @transform_1, window_bounds = array<i64: 8, 128>}, {transform_indices = @transform_2, window_bounds = array<i64: 1, 2, 8, 128>}]} {
    %c0_i32 = arith.constant 0 : i32
    %0 = arith.cmpi eq, %arg1, %c0_i32 : i32
    %1 = arith.extui %0 : i1 to i32
    %c0_i32_0 = arith.constant 0 : i32
    %2 = arith.cmpi ne, %1, %c0_i32_0 : i32
    scf.if %2 {
      %cst_31 = arith.constant 0.000000e+00 : f32
      %58 = vector.broadcast %cst_31 : f32 to vector<2x8x128xf32>
      %c0_32 = arith.constant 0 : index
      %c0_33 = arith.constant 0 : index
      %c0_34 = arith.constant 0 : index
      %59 = vector.load %arg5[%c0_32, %c0_33, %c0_34] : memref<2x8x128xf32, #tpu.memory_space<vmem>>, vector<2x8x128xf32>
      tpu.vector_store %arg5[%c0_32, %c0_33, %c0_34], %58 {strides = array<i32>} : memref<2x8x128xf32, #tpu.memory_space<vmem>>, vector<2x8x128xf32>,
    } else {
    }
    %c0 = arith.constant 0 : index
    %c0_1 = arith.constant 0 : index
    %3 = vector.load %arg2[%c0, %c0_1] : memref<8x128xf32, #tpu.memory_space<vmem>>, vector<8x128xf32>
    %c0_2 = arith.constant 0 : index
    %c0_3 = arith.constant 0 : index
    %4 = vector.load %arg3[%c0_2, %c0_3] : memref<8x128xf32, #tpu.memory_space<vmem>>, vector<8x128xf32>
    %cst = arith.constant 0.000000e+00 : f32
    %5 = vector.broadcast %cst : f32 to vector<8x128xf32>
    %6 = arith.subf %5, %3 : vector<8x128xf32>
    %cst_4 = arith.constant 0.000000e+00 : f32
    %7 = vector.broadcast %cst_4 : f32 to vector<8x128xf32>
    %8 = arith.maximumf %6, %7 : vector<8x128xf32>
    %9 = math.absf %6 : vector<8x128xf32>
    %cst_5 = arith.constant 0.000000e+00 : f32
    %10 = vector.broadcast %cst_5 : f32 to vector<8x128xf32>
    %11 = arith.subf %10, %9 : vector<8x128xf32>
    %12 = math.exp %11 : vector<8x128xf32>
    %cst_6 = arith.constant 1.000000e+00 : f32
    %13 = vector.broadcast %cst_6 : f32 to vector<8x128xf32>
    %14 = arith.addf %13, %12 : vector<8x128xf32>
    %15 = math.log %14 : vector<8x128xf32>
    %16 = arith.addf %8, %15 : vector<8x128xf32>
    %cst_7 = arith.constant 0.000000e+00 : f32
    %17 = vector.broadcast %cst_7 : f32 to vector<8x128xf32>
    %18 = arith.subf %17, %16 : vector<8x128xf32>
    %cst_8 = arith.constant -16.1180954 : f32
    %cst_9 = arith.constant -1.00000008E-7 : f32
    %19 = vector.broadcast %cst_8 : f32 to vector<8x128xf32>
    %20 = arith.maximumf %19, %18 : vector<8x128xf32>
    %21 = vector.broadcast %cst_9 : f32 to vector<8x128xf32>
    %22 = arith.minimumf %21, %20 : vector<8x128xf32>
    %cst_10 = arith.constant 0.000000e+00 : f32
    %23 = vector.broadcast %cst_10 : f32 to vector<8x128xf32>
    %24 = arith.maximumf %4, %23 : vector<8x128xf32>
    %25 = math.absf %4 : vector<8x128xf32>
    %cst_11 = arith.constant 0.000000e+00 : f32
    %26 = vector.broadcast %cst_11 : f32 to vector<8x128xf32>
    %27 = arith.subf %26, %25 : vector<8x128xf32>
    %28 = math.exp %27 : vector<8x128xf32>
    %cst_12 = arith.constant 1.000000e+00 : f32
    %29 = vector.broadcast %cst_12 : f32 to vector<8x128xf32>
    %30 = arith.addf %29, %28 : vector<8x128xf32>
    %31 = math.log %30 : vector<8x128xf32>
    %32 = arith.addf %24, %31 : vector<8x128xf32>
    %cst_13 = arith.constant 0.000000e+00 : f32
    %33 = vector.broadcast %cst_13 : f32 to vector<8x128xf32>
    %34 = arith.subf %33, %32 : vector<8x128xf32>
    %cst_14 = arith.constant -16.1180954 : f32
    %cst_15 = arith.constant -1.00000008E-7 : f32
    %35 = vector.broadcast %cst_14 : f32 to vector<8x128xf32>
    %36 = arith.maximumf %35, %34 : vector<8x128xf32>
    %37 = vector.broadcast %cst_15 : f32 to vector<8x128xf32>
    %38 = arith.minimumf %37, %36 : vector<8x128xf32>
    %c0_16 = arith.constant 0 : index
    %c0_17 = arith.constant 0 : index
    %c0_18 = arith.constant 0 : index
    %39 = vector.load %arg5[%c0_16, %c0_17, %c0_18] : memref<2x8x128xf32, #tpu.memory_space<vmem>>, vector<1x8x128xf32>
    %40 = vector.shape_cast %39 : vector<1x8x128xf32> to vector<8x128xf32>
    %41 = vector.shape_cast %22 : vector<8x128xf32> to vector<1x8x128xf32>
    %cst_19 = arith.constant dense<0.000000e+00> : vector<8x128xf32>
    %42 = vector.multi_reduction <add>, %41, %cst_19 [0] : vector<1x8x128xf32> to vector<8x128xf32>
    %43 = arith.addf %40, %42 : vector<8x128xf32>
    %c0_20 = arith.constant 0 : index
    %c0_21 = arith.constant 0 : index
    %c0_22 = arith.constant 0 : index
    %44 = vector.load %arg5[%c0_20, %c0_21, %c0_22] : memref<2x8x128xf32, #tpu.memory_space<vmem>>, vector<1x8x128xf32>
    %45 = vector.shape_cast %44 : vector<1x8x128xf32> to vector<8x128xf32>
    %46 = vector.shape_cast %43 : vector<8x128xf32> to vector<1x8x128xf32>
    tpu.vector_store %arg5[%c0_20, %c0_21, %c0_22], %46 {strides = array<i32>} : memref<2x8x128xf32, #tpu.memory_space<vmem>>, vector<1x8x128xf32>,
    %c1 = arith.constant 1 : index
    %c0_23 = arith.constant 0 : index
    %c0_24 = arith.constant 0 : index
    %47 = vector.load %arg5[%c1, %c0_23, %c0_24] : memref<2x8x128xf32, #tpu.memory_space<vmem>>, vector<1x8x128xf32>
    %48 = vector.shape_cast %47 : vector<1x8x128xf32> to vector<8x128xf32>
    %49 = vector.shape_cast %38 : vector<8x128xf32> to vector<1x8x128xf32>
    %cst_25 = arith.constant dense<0.000000e+00> : vector<8x128xf32>
    %50 = vector.multi_reduction <add>, %49, %cst_25 [0] : vector<1x8x128xf32> to vector<8x128xf32>
    %51 = arith.addf %48, %50 : vector<8x128xf32>
    %c1_26 = arith.constant 1 : index
    %c0_27 = arith.constant 0 : index
    %c0_28 = arith.constant 0 : index
    %52 = vector.load %arg5[%c1_26, %c0_27, %c0_28] : memref<2x8x128xf32, #tpu.memory_space<vmem>>, vector<1x8x128xf32>
    %53 = vector.shape_cast %52 : vector<1x8x128xf32> to vector<8x128xf32>
    %54 = vector.shape_cast %51 : vector<8x128xf32> to vector<1x8x128xf32>
    tpu.vector_store %arg5[%c1_26, %c0_27, %c0_28], %54 {strides = array<i32>} : memref<2x8x128xf32, #tpu.memory_space<vmem>>, vector<1x8x128xf32>,
    %c0_i32_29 = arith.constant 0 : i32
    %55 = arith.cmpi eq, %arg1, %c0_i32_29 : i32
    %56 = arith.extui %55 : i1 to i32
    %c0_i32_30 = arith.constant 0 : i32
    %57 = arith.cmpi ne, %56, %c0_i32_30 : i32
    scf.if %57 {
      %c0_31 = arith.constant 0 : index
      %c0_32 = arith.constant 0 : index
      %c0_33 = arith.constant 0 : index
      %58 = vector.load %arg5[%c0_31, %c0_32, %c0_33] : memref<2x8x128xf32, #tpu.memory_space<vmem>>, vector<2x8x128xf32>
      %c0_34 = arith.constant 0 : index
      %c0_35 = arith.constant 0 : index
      %c0_36 = arith.constant 0 : index
      %c0_37 = arith.constant 0 : index
      %59 = vector.load %arg4[%c0_34, %c0_35, %c0_36, %c0_37] : memref<1x2x8x128xf32, #tpu.memory_space<vmem>>, vector<1x2x8x128xf32>
      %60 = vector.shape_cast %59 : vector<1x2x8x128xf32> to vector<2x8x128xf32>
      %61 = vector.shape_cast %58 : vector<2x8x128xf32> to vector<1x2x8x128xf32>
      tpu.vector_store %arg4[%c0_34, %c0_35, %c0_36, %c0_37], %61 {strides = array<i32>} : memref<1x2x8x128xf32, #tpu.memory_space<vmem>>, vector<1x2x8x128xf32>,
    } else {
    }
    return
  }
  func.func @transform_0(%arg0: i32, %arg1: i32) -> (i32, i32) {
    %c1_i32 = arith.constant 1 : i32
    %0 = arith.muli %arg0, %c1_i32 : i32
    %1 = arith.addi %0, %arg1 : i32
    %c0_i32 = arith.constant 0 : i32
    %c0_i32_0 = arith.constant 0 : i32
    return %1, %c0_i32 : i32, i32
  }
  func.func @transform_1(%arg0: i32, %arg1: i32) -> (i32, i32) {
    %c1_i32 = arith.constant 1 : i32
    %0 = arith.muli %arg0, %c1_i32 : i32
    %1 = arith.addi %0, %arg1 : i32
    %c0_i32 = arith.constant 0 : i32
    %c0_i32_0 = arith.constant 0 : i32
    return %1, %c0_i32 : i32, i32
  }
  func.func @transform_2(%arg0: i32, %arg1: i32) -> (i32, i32, i32, i32) {
    %c0_i32 = arith.constant 0 : i32
    %c0_i32_0 = arith.constant 0 : i32
    %c0_i32_1 = arith.constant 0 : i32
    %c0_i32_2 = arith.constant 0 : i32
    return %arg0, %c0_i32, %c0_i32_0, %c0_i32_1 : i32, i32, i32, i32
  }
}

</mosaic_0001>

<bundles_post_ra>
// kernel: lim_loss.1
= control target key start
LH: loop header
LB: loop body
LE: loop exit
PB: predicated region body
PF: predicated region fallthrough
CT: control target
= control target key end

     0   :  { %7 = vsyncpa [#allocation4], 0  ;;  %s203_s0 = inlined_call_operand.hbm [shape: f32[8,128], index: 0, kind: input, shape index: {}]   ;;  %s204_s1 = inlined_call_operand.hbm [shape: f32[8,128], index: 1, kind: input, shape index: {}]   ;;  %s205_s2 = inlined_call_operand.vmem [shape: f32[1,2,8,128], index: 2, kind: output, shape index: {}]  }
   0x1   :  { %8 = vsyncpa [#allocation6], 0  ;;  %s156_s9 = smov [#allocation3]   ;;  %s157_s11 = smov [#allocation5]  }
   0x2   :  { %s18_s10 = sshll.u32 %s156_s9, 4  ;;  %s31_s12 = sshll.u32 %s157_s11, 4  ;;  %s19_s10 = int_to_ptr.vmem [resolvable:$true] %s18_s10  ;;  %s32_s12 = int_to_ptr.vmem [resolvable:$true] %s31_s12 }
   0x3   :  { %s108_s15 = scalar_lea.hbm %s203_s0, 128 }
   0x4   :  { %p109_p0 = scmp.ne.s32.totalorder %s203_s0, %s108_s15  ;;  %p112_p1 = scmp.lt.u32.totalorder %s108_s15, %s203_s0 }
   0x6   :  { %p114_p2 = pnand %p112_p1, %p109_p0 }
   0x8   :  { %117 = shalt.err (!%p114_p2)
}
   0x9   :  { %s118_s20 = scalar_lea.vmem %s19_s10, 128  ;;  %p123_p4 = scmp.lt.s32.totalorder %s19_s10, %s19_s10 }
   0xa   :  { %p119_p3 = scmp.ne.s32.totalorder %s19_s10, %s118_s20  ;;  %p124_p5 = scmp.lt.s32.totalorder %s118_s20, %s118_s20 }
   0xc   :  { %p125_p6 = por %p124_p5, %p123_p4 }
   0xe   :  { %p126_p7 = pnand %p125_p6, %p119_p3 }
  0x10   :  { %129 = shalt.err (!%p126_p7)
}
  0x11   :  { %21 = dma.hbm_to_vmem [thread:$0]  %s203_s0, 128, %s19_s10, [#allocation4]  }
  0x12   :  { %s130_s25 = scalar_lea.hbm %s204_s1, 128 }
  0x13   :  { %p131_p8 = scmp.ne.s32.totalorder %s204_s1, %s130_s25  ;;  %p134_p9 = scmp.lt.u32.totalorder %s130_s25, %s204_s1 }
  0x15   :  { %p136_p10 = pnand %p134_p9, %p131_p8 }
  0x17   :  { %139 = shalt.err (!%p136_p10)
}
  0x18   :  { %s140_s30 = scalar_lea.vmem %s32_s12, 128  ;;  %p145_p12 = scmp.lt.s32.totalorder %s32_s12, %s32_s12 }
  0x19   :  { %p141_p11 = scmp.ne.s32.totalorder %s32_s12, %s140_s30  ;;  %p146_p13 = scmp.lt.s32.totalorder %s140_s30, %s140_s30 }
  0x1b   :  { %p147_p0 = por %p146_p13, %p145_p12 }
  0x1d   :  { %p148_p1 = pnand %p147_p0, %p141_p11 }
  0x1f   :  { %151 = shalt.err (!%p148_p1)
}
  0x20   :  { %34 = dma.hbm_to_vmem [thread:$0]  %s204_s1, 128, %s32_s12, [#allocation6]  }
  0x21   :  { %152 = dma.done.wait [#allocation4], 128  }
  0x22   :  { %153 = vsyncadd [#allocation4], 4294967168 }
  0x23   :  { %154 = dma.done.wait [#allocation6], 128  }
  0x24   :  { %155 = vsyncadd [#allocation6], 4294967168  ;;  %v49_v0 = vld [vmem:[#allocation3] sm:$0xff]  ;;  %v50_v1 = vld [vmem:[#allocation5] sm:$0xff] }
  0x25   :  { %v51_v2 = vsub.f32 0.0, %v49_v0  ;;  %v65_v3 = vand.u32 2147483647, %v50_v1  ;;  %v64_v13 = vmax.f32 %v50_v1, 0.0 }
  0x27   :  { %v53_v4 = vand.u32 2147483647, %v51_v2  ;;  %v66_v5 = vsub.f32 0.0, %v65_v3  ;;  %v52_v15 = vmax.f32 %v51_v2, 0.0 }
  0x29   :  { %v54_v6 = vsub.f32 0.0, %v53_v4  ;;  %v67_v7 = vmul.f32 1.442695, %v66_v5 }
  0x2b   :  { %v55_v8 = vmul.f32 1.442695, %v54_v6  ;;  %100 = vpow2.f32 %v67_v7 }
  0x2d   :  { %102 = vpow2.f32 %v55_v8 }
  0x35   :  { %v101_v9 = vpop.eup %100 }
  0x36   :  { %v69_v10 = vadd.f32 1.0, %v101_v9 }
  0x37   :  { %v103_v11 = vpop.eup %102 }
  0x38   :  { %v57_v12 = vadd.f32 1.0, %v103_v11  ;;  %104 = vlog2.f32 %v69_v10 }
  0x3a   :  { %106 = vlog2.f32 %v57_v12 }
  0x42   :  { %v105_v14 = vpop.eup %104 }
  0x43   :  { %v71_v16 = vmul.f32 0.6931472, %v105_v14 }
  0x44   :  { %v107_v17 = vpop.eup %106 }
  0x45   :  { %v59_v18 = vmul.f32 0.6931472, %v107_v17  ;;  %v72_v19 = vadd.f32 %v71_v16, %v64_v13 }
  0x47   :  { %v60_v20 = vadd.f32 %v59_v18, %v52_v15  ;;  %v73_v21 = vsub.f32 0.0, %v72_v19 }
  0x49   :  { %v61_v22 = vsub.f32 0.0, %v60_v20  ;;  %v74_v23 = vmax.f32 %v73_v21, -16.118095 }
  0x4b   :  { %v62_v24 = vmax.f32 %v61_v22, -16.118095  ;;  %v75_v25 = vmin.f32 %v74_v23, -1.0000001e-07 }
  0x4d   :  { %v63_v26 = vmin.f32 %v62_v24, -1.0000001e-07  ;;  %91 = vst [vmem:[%s205_s2 + $0x8] sm:$0xff] %v75_v25 }
  0x4f   :  { %90 = vst [vmem:[%s205_s2] sm:$0xff] %v63_v26 }
  0x50   :  { %96 = vsyncpa [#allocation4], 1 }
  0x51   :  { %97 = vsyncpa [#allocation6], 1 }

</bundles_post_ra>
